<compile_context>
chip_gen: v5e
topology: v5e:2x2
jax: 0.10.0
libtpu: 0.0.40
codegen_flags: <defaults>
</compile_context>

<pallas_src>
import functools

import jax
import jax.numpy as jnp
from jax.experimental import pallas as pl
from jax.experimental.pallas import tpu as pltpu


def _round_up(n: int, m: int) -> int:
    return ((n + m - 1) // m) * m


def _pad2d(a, rows: int, cols: int):
    if a.shape == (rows, cols):
        return a
    return jnp.pad(a, ((0, rows - a.shape[0]), (0, cols - a.shape[1])))


_VMEM_CAP_CACHE = None


def _device_vmem_bytes() -> int:
    """Per-core VMEM capacity; conservative fallback if query unavailable."""
    global _VMEM_CAP_CACHE
    if _VMEM_CAP_CACHE is None:
        try:
            _VMEM_CAP_CACHE = int(pltpu.get_tpu_info().vmem_capacity_bytes)
        except Exception:
            _VMEM_CAP_CACHE = 64 << 20  # v7x per-core size: safe on all gens
    return _VMEM_CAP_CACHE


def mlp_kernel(x_ref, w1_ref, b1_ref, w2_ref, b2_ref, w3_ref, b3_ref, o_ref):
    # In-kernel bf16 cast of x (VPU filler under the MXU; avoids a wrapper pass).
    x = x_ref[...].astype(jnp.bfloat16)
    # Layer 1: Linear + ReLU  (bf16 x bf16 -> f32 accumulate on MXU)
    h1 = jnp.dot(x, w1_ref[...], preferred_element_type=jnp.float32)
    h1 = jnp.maximum(h1 + b1_ref[...], 0.0)
    # Layer 2: Linear + ReLU
    h2 = jnp.dot(h1.astype(jnp.bfloat16), w2_ref[...],
                 preferred_element_type=jnp.float32)
    h2 = jnp.maximum(h2 + b2_ref[...], 0.0)
    # Layer 3: Linear (no activation)
    out = jnp.dot(h2.astype(jnp.bfloat16), w3_ref[...],
                  preferred_element_type=jnp.float32) + b3_ref[...]
    o_ref[...] = out.astype(o_ref.dtype)


def prepare_mlp_params(params):
    """One-time pad (lane-dense multiples of 128) + bf16 cast of weights.

    Returns (padded_params, dims) where dims is a hashable tuple of the original
    and padded sizes (used as a static jit argument)."""
    w1, b1 = params["w1"], params["b1"]
    w2, b2 = params["w2"], params["b2"]
    w3, b3 = params["w3"], params["b3"]
    K, H1 = w1.shape
    H2, N = w2.shape[1], w3.shape[1]
    K_p, H1_p, H2_p, N_p = (_round_up(d, 128) for d in (K, H1, H2, N))
    # Zero padding is exact: padded K rows / hidden cols feed zero weights
    # downstream; padded output cols are sliced off after the kernel.
    padded = {
        "w1": _pad2d(w1, K_p, H1_p).astype(jnp.bfloat16),
        "w2": _pad2d(w2, H1_p, H2_p).astype(jnp.bfloat16),
        "w3": _pad2d(w3, H2_p, N_p).astype(jnp.bfloat16),
        "b1": _pad2d(b1, 1, H1_p).astype(jnp.float32),
        "b2": _pad2d(b2, 1, H2_p).astype(jnp.float32),
        "b3": _pad2d(b3, 1, N_p).astype(jnp.float32),
    }
    dims = (K, H1, H2, N, K_p, H1_p, H2_p, N_p)
    return padded, dims


@functools.partial(jax.jit, static_argnames=("dims", "tm"))
def mlp_forward(x, padded_params, dims, tm=None):
    """x: [B, input_size] float32. padded_params/dims from prepare_mlp_params."""
    K, H1, H2, N, K_p, H1_p, H2_p, N_p = dims
    B = x.shape[0]
    assert x.shape[1] == K

    vmem_cap = _device_vmem_bytes()

    # Batch tile: target ~8 grid steps (pipelining + v7x megacore sharding),
    # cap rows/step at 512 (1024 on 128-MiB-VMEM parts), floor at one sublane (8).
    if tm is None:
        row_cap = 1024 if vmem_cap >= (96 << 20) else 512
        tm = max(8, min(row_cap, _round_up(pl.cdiv(B, 8), 8)))
    else:
        tm = _round_up(tm, 8)
    B_p = _round_up(B, tm)
    grid = (B_p // tm,)

    # x stays f32; pad only when needed (bf16 cast happens inside the kernel).
    x_p = x if (B_p == B and K_p == K) else jnp.pad(
        x, ((0, B_p - B), (0, K_p - K)))

    w1_p, b1_p = padded_params["w1"], padded_params["b1"]
    w2_p, b2_p = padded_params["w2"], padded_params["b2"]
    w3_p, b3_p = padded_params["w3"], padded_params["b3"]

    # VMEM budget: every input is double-buffered by the pipeline (including the
    # constant-index resident weights), plus f32/bf16 intermediates.
    bytes_weights = 2 * (K_p * H1_p + H1_p * H2_p + H2_p * N_p) * 2   # bf16 x2 bufs
    bytes_biases = 2 * (H1_p + H2_p + N_p) * 4
    bytes_x_tiles = 2 * tm * K_p * 4                                   # f32 x2 bufs
    bytes_out_tiles = 2 * tm * N_p * 4
    bytes_interm = tm * (2 * K_p + 6 * H1_p + 6 * H2_p)                # bf16 x, f32+bf16 h1/h2
    vmem_budget = int(1.25 * (bytes_weights + bytes_biases + bytes_x_tiles
                              + bytes_out_tiles + bytes_interm)) + (2 << 20)
    # Clamp to ~90% of the device's per-core VMEM (v7x: 64 MiB, v5e/v6e: 128 MiB).
    vmem_limit = min(max(vmem_budget, 32 << 20), int(0.9 * vmem_cap))

    flops = 2 * B_p * (K_p * H1_p + H1_p * H2_p + H2_p * N_p)
    bytes_accessed = (B_p * K_p * 4
                      + (K_p * H1_p + H1_p * H2_p + H2_p * N_p) * 2
                      + (H1_p + H2_p + N_p) * 4
                      + B_p * N_p * 4)

    def resident(shape):
        # Same block every grid step -> DMA'd once, stays VMEM-resident.
        return pl.BlockSpec(shape, lambda i: (0,) * len(shape))

    out_p = pl.pallas_call(
        mlp_kernel,
        out_shape=jax.ShapeDtypeStruct((B_p, N_p), jnp.float32),
        grid_spec=pltpu.PrefetchScalarGridSpec(
            num_scalar_prefetch=0,
            grid=grid,
            in_specs=[
                pl.BlockSpec((tm, K_p), lambda i: (i, 0)),
                resident((K_p, H1_p)), resident((1, H1_p)),
                resident((H1_p, H2_p)), resident((1, H2_p)),
                resident((H2_p, N_p)), resident((1, N_p)),
            ],
            out_specs=pl.BlockSpec((tm, N_p), lambda i: (i, 0)),
        ),
        compiler_params=pltpu.CompilerParams(
            dimension_semantics=("parallel",),
            vmem_limit_bytes=vmem_limit,
        ),
        cost_estimate=pl.CostEstimate(
            flops=flops, transcendentals=0, bytes_accessed=bytes_accessed),
    )(x_p, w1_p, b1_p, w2_p, b2_p, w3_p, b3_p)

    return out_p[:B, :N]


def init_mlp_params(key, input_size, common_size):
    """Deterministic init mirroring the torch module's layer shapes.
    Weights stored as [in_features, out_features] (transposed vs torch)."""
    h1 = input_size // 2
    h2 = input_size // 4
    dims = [(input_size, h1), (h1, h2), (h2, common_size)]
    params = {}
    for i, (fan_in, fan_out) in enumerate(dims, start=1):
        key, kw, kb = jax.random.split(key, 3)
        bound = 1.0 / (fan_in ** 0.5)  # torch.nn.Linear default uniform bound
        params[f"w{i}"] = jax.random.uniform(
            kw, (fan_in, fan_out), jnp.float32, -bound, bound)
        params[f"b{i}"] = jax.random.uniform(
            kb, (1, fan_out), jnp.float32, -bound, bound)
    return params


if __name__ == "__main__":
    key = jax.random.PRNGKey(0)
    key, kx = jax.random.split(key)

    batch = 256
    input_size = 256   # -> hidden dims 128, 64
    common_size = 32

    x = jax.random.normal(kx, (batch, input_size), dtype=jnp.float32)
    params = init_mlp_params(key, input_size, common_size)

    # One-time pad + cast (outside the per-call path).
    padded_params, dims = prepare_mlp_params(params)

    out = mlp_forward(x, padded_params, dims)   # default tm -> multi-step grid
    jax.block_until_ready(out)
    assert out.shape == (batch, common_size)

    # Pure-JAX reference with the same bf16-input / f32-accumulate math.
    bf = jnp.bfloat16
    ref = jnp.maximum(
        jnp.dot(x.astype(bf), params["w1"].astype(bf),
                preferred_element_type=jnp.float32) + params["b1"], 0.0)
    ref = jnp.maximum(
        jnp.dot(ref.astype(bf), params["w2"].astype(bf),
                preferred_element_type=jnp.float32) + params["b2"], 0.0)
    ref = jnp.dot(ref.astype(bf), params["w3"].astype(bf),
                  preferred_element_type=jnp.float32) + params["b3"]

    assert jnp.allclose(out, ref, atol=1e-2, rtol=1e-2), (
        float(jnp.max(jnp.abs(out - ref))))

    print("KERNEL_OK")
</pallas_src>

<mosaic_0001>
module attributes {stable_mosaic.version = 11 : i64} {
  func.func @mlp_kernel(%arg0: i32, %arg1: memref<32x256xf32, #tpu.memory_space<vmem>>, %arg2: memref<256x128xbf16, #tpu.memory_space<vmem>>, %arg3: memref<1x128xf32, #tpu.memory_space<vmem>>, %arg4: memref<128x128xbf16, #tpu.memory_space<vmem>>, %arg5: memref<1x128xf32, #tpu.memory_space<vmem>>, %arg6: memref<128x128xbf16, #tpu.memory_space<vmem>>, %arg7: memref<1x128xf32, #tpu.memory_space<vmem>>, %arg8: memref<32x128xf32, #tpu.memory_space<vmem>>) attributes {dimension_semantics = [#tpu.dimension_semantics<parallel>], iteration_bounds = array<i64: 8>, scalar_prefetch = 0 : i64, scratch_operands = 0 : i64, tpu.core_type = #tpu.core_type<tc>, window_params = [{transform_indices = @transform_0, window_bounds = array<i64: 32, 256>}, {pipeline_mode = #tpu.pipeline_mode<synchronous>, transform_indices = @transform_1, window_bounds = array<i64: 256, 128>}, {pipeline_mode = #tpu.pipeline_mode<synchronous>, transform_indices = @transform_2, window_bounds = array<i64: 1, 128>}, {pipeline_mode = #tpu.pipeline_mode<synchronous>, transform_indices = @transform_3, window_bounds = array<i64: 128, 128>}, {pipeline_mode = #tpu.pipeline_mode<synchronous>, transform_indices = @transform_4, window_bounds = array<i64: 1, 128>}, {pipeline_mode = #tpu.pipeline_mode<synchronous>, transform_indices = @transform_5, window_bounds = array<i64: 128, 128>}, {pipeline_mode = #tpu.pipeline_mode<synchronous>, transform_indices = @transform_6, window_bounds = array<i64: 1, 128>}, {transform_indices = @transform_7, window_bounds = array<i64: 32, 128>}]} {
    %c0 = arith.constant 0 : index
    %c0_0 = arith.constant 0 : index
    %0 = vector.load %arg1[%c0, %c0_0] : memref<32x256xf32, #tpu.memory_space<vmem>>, vector<32x256xf32>
    %1 = arith.truncf %0 : vector<32x256xf32> to vector<32x256xbf16>
    %c0_1 = arith.constant 0 : index
    %c0_2 = arith.constant 0 : index
    %2 = vector.load %arg2[%c0_1, %c0_2] : memref<256x128xbf16, #tpu.memory_space<vmem>>, vector<256x128xbf16>
    %cst = arith.constant dense<0.000000e+00> : vector<32x128xf32>
    %3 = tpu.matmul %1, %2, %cst {dimension_numbers = #tpu.dot_dimension_numbers<[1], [0], [0], [1], [0, 0, 1, 1], [], []>} : vector<32x256xbf16>, vector<256x128xbf16>, vector<32x128xf32> -> vector<32x128xf32>
    %c0_3 = arith.constant 0 : index
    %c0_4 = arith.constant 0 : index
    %4 = vector.load %arg3[%c0_3, %c0_4] : memref<1x128xf32, #tpu.memory_space<vmem>>, vector<1x128xf32>
    %5 = vector.broadcast %4 : vector<1x128xf32> to vector<32x128xf32>
    %6 = arith.addf %3, %5 : vector<32x128xf32>
    %cst_5 = arith.constant 0.000000e+00 : f32
    %7 = vector.broadcast %cst_5 : f32 to vector<32x128xf32>
    %8 = arith.maximumf %6, %7 : vector<32x128xf32>
    %9 = arith.truncf %8 : vector<32x128xf32> to vector<32x128xbf16>
    %c0_6 = arith.constant 0 : index
    %c0_7 = arith.constant 0 : index
    %10 = vector.load %arg4[%c0_6, %c0_7] : memref<128x128xbf16, #tpu.memory_space<vmem>>, vector<128x128xbf16>
    %cst_8 = arith.constant dense<0.000000e+00> : vector<32x128xf32>
    %11 = tpu.matmul %9, %10, %cst_8 {dimension_numbers = #tpu.dot_dimension_numbers<[1], [0], [0], [1], [0, 0, 1, 1], [], []>} : vector<32x128xbf16>, vector<128x128xbf16>, vector<32x128xf32> -> vector<32x128xf32>
    %c0_9 = arith.constant 0 : index
    %c0_10 = arith.constant 0 : index
    %12 = vector.load %arg5[%c0_9, %c0_10] : memref<1x128xf32, #tpu.memory_space<vmem>>, vector<1x128xf32>
    %13 = vector.broadcast %12 : vector<1x128xf32> to vector<32x128xf32>
    %14 = arith.addf %11, %13 : vector<32x128xf32>
    %cst_11 = arith.constant 0.000000e+00 : f32
    %15 = vector.broadcast %cst_11 : f32 to vector<32x128xf32>
    %16 = arith.maximumf %14, %15 : vector<32x128xf32>
    %17 = arith.truncf %16 : vector<32x128xf32> to vector<32x128xbf16>
    %c0_12 = arith.constant 0 : index
    %c0_13 = arith.constant 0 : index
    %18 = vector.load %arg6[%c0_12, %c0_13] : memref<128x128xbf16, #tpu.memory_space<vmem>>, vector<128x128xbf16>
    %cst_14 = arith.constant dense<0.000000e+00> : vector<32x128xf32>
    %19 = tpu.matmul %17, %18, %cst_14 {dimension_numbers = #tpu.dot_dimension_numbers<[1], [0], [0], [1], [0, 0, 1, 1], [], []>} : vector<32x128xbf16>, vector<128x128xbf16>, vector<32x128xf32> -> vector<32x128xf32>
    %c0_15 = arith.constant 0 : index
    %c0_16 = arith.constant 0 : index
    %20 = vector.load %arg7[%c0_15, %c0_16] : memref<1x128xf32, #tpu.memory_space<vmem>>, vector<1x128xf32>
    %21 = vector.broadcast %20 : vector<1x128xf32> to vector<32x128xf32>
    %22 = arith.addf %19, %21 : vector<32x128xf32>
    %c0_17 = arith.constant 0 : index
    %c0_18 = arith.constant 0 : index
    %23 = vector.load %arg8[%c0_17, %c0_18] : memref<32x128xf32, #tpu.memory_space<vmem>>, vector<32x128xf32>
    tpu.vector_store %arg8[%c0_17, %c0_18], %22 {strides = array<i32>} : memref<32x128xf32, #tpu.memory_space<vmem>>, vector<32x128xf32>,
    return
  }
  func.func @transform_0(%arg0: i32) -> (i32, i32) {
    %c0_i32 = arith.constant 0 : i32
    %c0_i32_0 = arith.constant 0 : i32
    return %arg0, %c0_i32 : i32, i32
  }
  func.func @transform_1(%arg0: i32) -> (i32, i32) {
    %c0_i32 = arith.constant 0 : i32
    %c0_i32_0 = arith.constant 0 : i32
    %c0_i32_1 = arith.constant 0 : i32
    return %c0_i32, %c0_i32_0 : i32, i32
  }
  func.func @transform_2(%arg0: i32) -> (i32, i32) {
    %c0_i32 = arith.constant 0 : i32
    %c0_i32_0 = arith.constant 0 : i32
    %c0_i32_1 = arith.constant 0 : i32
    return %c0_i32, %c0_i32_0 : i32, i32
  }
  func.func @transform_3(%arg0: i32) -> (i32, i32) {
    %c0_i32 = arith.constant 0 : i32
    %c0_i32_0 = arith.constant 0 : i32
    %c0_i32_1 = arith.constant 0 : i32
    return %c0_i32, %c0_i32_0 : i32, i32
  }
  func.func @transform_4(%arg0: i32) -> (i32, i32) {
    %c0_i32 = arith.constant 0 : i32
    %c0_i32_0 = arith.constant 0 : i32
    %c0_i32_1 = arith.constant 0 : i32
    return %c0_i32, %c0_i32_0 : i32, i32
  }
  func.func @transform_5(%arg0: i32) -> (i32, i32) {
    %c0_i32 = arith.constant 0 : i32
    %c0_i32_0 = arith.constant 0 : i32
    %c0_i32_1 = arith.constant 0 : i32
    return %c0_i32, %c0_i32_0 : i32, i32
  }
  func.func @transform_6(%arg0: i32) -> (i32, i32) {
    %c0_i32 = arith.constant 0 : i32
    %c0_i32_0 = arith.constant 0 : i32
    %c0_i32_1 = arith.constant 0 : i32
    return %c0_i32, %c0_i32_0 : i32, i32
  }
  func.func @transform_7(%arg0: i32) -> (i32, i32) {
    %c0_i32 = arith.constant 0 : i32
    %c0_i32_0 = arith.constant 0 : i32
    return %arg0, %c0_i32 : i32, i32
  }
}

</mosaic_0001>

<bundles_post_ra>
// kernel: mlp_forward.1
= control target key start
LH: loop header
LB: loop body
LE: loop exit
PB: predicated region body
PF: predicated region fallthrough
CT: control target
= control target key end

     0   :  { %12 = vsyncpa [#allocation3], 0  ;;  %s1505_s0 = inlined_call_operand.hbm [shape: f32[256,256], index: 0, kind: input, shape index: {}]   ;;  %s1506_s1 = inlined_call_operand.hbm [shape: bf16[256,128], index: 1, kind: input, shape index: {}]   ;;  %s1507_s2 = inlined_call_operand.hbm [shape: f32[1,128], index: 2, kind: input, shape index: {}]   ;;  %s1508_s3 = inlined_call_operand.hbm [shape: bf16[128,128], index: 3, kind: input, shape index: {}]   ;;  %s1509_s4 = inlined_call_operand.vmem [shape: f32[1,128], index: 4, kind: input, shape index: {}]   ;;  %s1510_s5 = inlined_call_operand.hbm [shape: bf16[128,128], index: 5, kind: input, shape index: {}]   ;;  %s1511_s6 = inlined_call_operand.vmem [shape: f32[1,128], index: 6, kind: input, shape index: {}]   ;;  %s1512_s7 = inlined_call_operand.vmem [shape: f32[256,128], index: 7, kind: output, shape index: {}]  }
   0x1   :  { %14 = vsyncpa [#allocation3 + $0x1], 0 }
   0x2   :  { %15 = vsyncpa [#allocation5], 0 }
   0x3   :  { %16 = vsyncpa [#allocation8], 0  ;;  %s1358_s24 = smov 0   ;;  %s1360_s25 = smov 0  }
   0x4   :  { %s1362_s26 = smov 0   ;;  %s1364_s27 = smov 0  }
   0x5 LB: > { %s1513_s28 = sadd.s32 4294967295, %s1308_s27   ;;  %p42_p0 = scmp.ne.s32.totalorder %s1300_s25, %s1296_s24  ;;  %s1308_s27 = sphi %s1364_s27, %s1523_s27   ;;  %s1304_s26 = sphi %s1362_s26, %s1522_s26   ;;  %s1300_s25 = sphi %s1360_s25, %s1521_s25   ;;  %s1296_s24 = sphi %s1358_s24, %s1520_s24  }
   0x6   : > { %p1380_p1 = scmp.eq.s32.totalorder %s1513_s28, 0  ;;  %p847_p2 = scmp.ge.s32.totalorder %s1308_s27, 1 }
   0x7   : > { %p205_p3 = scmp.lt.s32.totalorder %s1308_s27, 9  ;;  %s216_s10 = sshll.u32 %s1506_s1, 4  ;;  %s217_s10 = int_to_ptr.hbm [resolvable:$true] %s216_s10 }
   0x8   : > { %p1388_p4 = por %p1380_p1, %p42_p0  ;;  %s1310_s12 = smov [#allocation4]  }
   0x9   : > { %p1395_p5 = pnand %p847_p2, %p205_p3  ;;  %s218_s13 = sshll.u32 %s1310_s12, 4  ;;  %s219_s13 = int_to_ptr.vmem [resolvable:$true] %s218_s13 }
   0xa   : > { %s242_s17 = sshll.u32 %s1508_s3, 4  ;;  %s1311_s18 = smov 64   ;;  %s243_s17 = int_to_ptr.hbm [resolvable:$true] %s242_s17 }
   0xb   : > { %p1047_p6 = pneg %p1395_p5  ;;  %s1312_s19 = smov 4  }
   0xc   : > { %s1313_s20 = smov [#allocation7]   ;;  %s231_s24 = sshll.u32 %s1507_s2, 4  ;;  %s232_s24 = int_to_ptr.hbm [resolvable:$true] %s231_s24 }
   0xd   : > { %p1403_p7 = pnand %p1047_p6, %p1380_p1  ;;  %s244_s21 = sshll.u32 %s1313_s20, 4  ;;  %s245_s21 = int_to_ptr.vmem [resolvable:$true] %s244_s21 }
   0xe   : > { %s1314_s12 = smov [#allocation6]   ;;  %s1315_s15 = smov [#allocation9]  }
   0xf   : > { %1050 = dma.hbm_to_vmem [thread:$0]  (!%p1403_p7), %s217_s10, 2048, %s219_s13, [#allocation5], %s1311_s18, %s1311_s18, %s1312_s19  }
  0x10   : > { %1056 = dma.hbm_to_vmem [thread:$0]  (!%p1403_p7), %s243_s17, 1024, %s245_s21, [#allocation8], %s1311_s18, %s1311_s18, %s1312_s19  }
  0x11   : > { %s259_s10 = sshll.u32 %s1510_s5, 4  ;;  %s233_s13 = sshll.u32 %s1314_s12, 4  ;;  %s260_s10 = int_to_ptr.hbm [resolvable:$true] %s259_s10  ;;  %s234_s13 = int_to_ptr.vmem [resolvable:$true] %s233_s13 }
  0x12   : > { %1053 = dma.hbm_to_vmem [thread:$0]  (!%p1403_p7), %s232_s24, 16, %s234_s13, [#allocation5]  }
  0x13   : > { %s261_s16 = sshll.u32 %s1315_s15, 4  ;;  %s1425_s17 = sadd.s32 1, %s1308_s27   ;;  %s262_s16 = int_to_ptr.vmem [resolvable:$true] %s261_s16 }
  0x14   : > { %1059 = dma.hbm_to_vmem [thread:$0]  (!%p1403_p7), %s260_s10, 1024, %s262_s16, [#allocation8], %s1311_s18, %s1311_s18, %s1312_s19  }
  0x15   : > { %s29_s20 = sadd.s32 1, %s1304_s26  ;;  %s26_s21 = ssub.s32 %s1308_s27, %s1425_s17 }
  0x16   : > { %p36_p8 = scmp.ne.s32.totalorder %s1304_s26, %s1300_s25  ;;  %p27_p9 = scmp.eq.s32.totalorder %s26_s21, 0 }
  0x17   : > { %p37_p10 = scmp.eq.s32.totalorder %s1308_s27, 0  ;;  %p1068_p11 = scmp.lt.s32.totalorder %s1308_s27, 8 }
  0x18   : > { %s278_s22 = sand.u32 1, %s1304_s26   ;;  %s996_s8 = sshll.u32 %s1308_s27, 6 }
  0x19   : > { %s1436_s23 = scalar_select %p27_p9, %s1304_s26, %s29_s20  }
  0x1a   : > { %p38_p12 = por %p37_p10, %p36_p8  ;;  %s853_s24 = sshll.u32 %s278_s22, 6 }
  0x1b   : > { %s288_s14 = scalar_lea.hbm %s1505_s0, %s996_s8  ;;  %s282_s19 = scalar_lea.vmem [#allocation2], %s853_s24 }
  0x1c   : > { %s289_s18 = sshll.u32 %s288_s14, 4  ;;  %s291_s10 = sshll.u32 %s282_s19, 4  ;;  %s290_s18 = int_to_ptr.hbm [resolvable:$true] %s289_s18  ;;  %s292_s10 = int_to_ptr.vmem [resolvable:$true] %s291_s10 }
  0x1d   : > { %p1442_p13 = pnand %p1068_p11, %p38_p12  ;;  %s279_s15 = scalar_lea.sflag [#allocation3], %s278_s22 }
  0x1e   : > { %s1236_s16 = sshra.s32 %s290_s18, 4  ;;  %s1243_s24 = scalar_lea.hbm %s1505_s0, 512  ;;  %s1237_s16 = int_to_ptr.hbm [resolvable:$true] %s1236_s16 }
  0x1f   : > { %s1238_s20 = scalar_lea.hbm %s1237_s16, 64  ;;  %p1240_p2 = pneg %p1442_p13 }
  0x20   : > { %p1239_p0 = scmp.ne.s32.totalorder %s1237_s16, %s1238_s20  ;;  %p1244_p7 = scmp.lt.s32.totalorder %s1237_s16, %s1505_s0 }
  0x21   : > { %p1245_p8 = scmp.lt.s32.totalorder %s1243_s24, %s1238_s20 }
  0x22   : > { %p1241_p3 = pnand %p1240_p2, %p1239_p0 }
  0x23   : > { %p1246_p9 = por %p1245_p8, %p1244_p7 }
  0x24   : > { %p1242_p6 = pneg %p1241_p3 }
  0x26   : > { %p1247_p10 = pnand %p1246_p9, %p1242_p6 }
  0x28   : > { %1250 = shalt.err (!%p1247_p10)
}
  0x29   : > { %s1316_s22 = smov 256   ;;  %s1317_s14 = smov 16  }
  0x2a   : > { %1063 = dma.hbm_to_vmem [thread:$0]  (!%p1442_p13), %s290_s18, 1024, %s292_s10, %s279_s15, %s1316_s22, %s1316_s22, %s1317_s14  }
  0x2b   : > { %303 = sbr.rel (%p1395_p5) target bundleno = 532 (0x214), region = 48  ;;  %s305_s19 = sand.u32 (!%p1395_p5), 1, %s1300_s25  }
  0x2c   : > { %s858_s21 = sshll.u32 (!%p1395_p5), %s305_s19, 6  ;;  %s306_s8 = scalar_lea.sflag (!%p1395_p5), [#allocation3], %s305_s19 }
  0x2d   : > { %s1459_s28 = scalar_lea.vmem (!%p1395_p5), [#allocation2], %s858_s21 }
  0x30   : > { %1283 = dma.done.wait (%p1388_p4), %s306_s8, 1024  }
  0x31   : > { %1285 = vsyncadd (%p1388_p4), %s306_s8, 4294966272 }
  0x32   : > { %1287 = dma.done.wait (%p1380_p1), [#allocation5], 2064  }
  0x33   : > { %1289 = vsyncadd (%p1380_p1), [#allocation5], 4294965232 }
  0x34   : > { %1291 = dma.done.wait (%p1380_p1), [#allocation8], 2048  }
  0x35   : > { %1293 = vsyncadd (%p1380_p1), [#allocation8], 4294965248  ;;  %v1004_v0 = vld [vmem:[#allocation4 + $0x38] sm:$0xff]  ;;  %v1003_v2 = vld [vmem:[#allocation4 + $0x30] sm:$0xff]  ;;  %s1519_s30 = sadd.s32 4294967295, %s1308_s27  }
  0x36   : > { %v1012_v1 = vld [vmem:[#allocation4 + $0x78] sm:$0xff]  ;;  %512 = vmatpush.bf16.msra.mxu0 %v1004_v0  ;;  %v1011_v3 = vld [vmem:[#allocation4 + $0x70] sm:$0xff]  ;;  %v1002_v4 = vld [vmem:[#allocation4 + $0x28] sm:$0xff]  ;;  %s863_s11 = sshll.u32 %s1519_s30, 2 }
  0x37   : > { %531 = vmatpush.bf16.msra.mxu1 %v1012_v1  ;;  %v1010_v5 = vld [vmem:[#allocation4 + $0x68] sm:$0xff]  ;;  %v1001_v6 = vld [vmem:[#allocation4 + $0x20] sm:$0xff]  ;;  %v1000_v8 = vld [vmem:[#allocation4 + $0x18] sm:$0xff]  ;;  %p363_p1 = scmp.lt.s32.totalorder %s863_s11, 31 }
  0x38   : > { %v1009_v7 = vld [vmem:[#allocation4 + $0x60] sm:$0xff]  ;;  %v1008_v9 = vld [vmem:[#allocation4 + $0x58] sm:$0xff]  ;;  %v999_v11 = vld [vmem:[#allocation4 + $0x10] sm:$0xff] }
  0x39   : > { %v1020_v10 = vld [vmem:[#allocation7 + $0x38] sm:$0xff]  ;;  %v1007_v12 = vld [vmem:[#allocation4 + $0x50] sm:$0xff]  ;;  %v998_v14 = vld [vmem:[#allocation4 + $0x8] sm:$0xff]  ;;  %s1525_s11 = smov (!%p363_p1, %s863_s11), 31 }
  0x3a   : > { %513 = vmatpush.bf16.msra.mxu0 %v1003_v2  ;;  %624 = vmatpush.bf16.msra.mxu2 %v1020_v10  ;;  %v1019_v13 = vld [vmem:[#allocation7 + $0x30] sm:$0xff]  ;;  %v1006_v15 = vld [vmem:[#allocation4 + $0x48] sm:$0xff]  ;;  %v997_v17 = vld [vmem:[#allocation4] sm:$0xff]  ;;  %s864_s18 = sshll.u32 %s1525_s11, 3 }
  0x3b   : > { %532 = vmatpush.bf16.msra.mxu1 %v1011_v3  ;;  %v1018_v16 = vld [vmem:[#allocation7 + $0x28] sm:$0xff]  ;;  %v1005_v18 = vld [vmem:[#allocation4 + $0x40] sm:$0xff]  ;;  %v371_v22 = vld [vmem:[%s1459_s28 + $0x18] sm:$0xff]  ;;  %s366_s20 = scalar_lea.vmem %s1512_s7, %s864_s18 }
  0x3c   : > { %v368_v19 = vld [vmem:[%s1459_s28] sm:$0xff]  ;;  %v370_v20 = vld [vmem:[%s1459_s28 + $0x10] sm:$0xff]  ;;  %v369_v21 = vld [vmem:[%s1459_s28 + $0x8] sm:$0xff] }
  0x3d   : > { %v1017_v23 = vld [vmem:[#allocation7 + $0x20] sm:$0xff]  ;;  %v376_v24 = vpack.c.bf16 %v370_v20, %v368_v19  ;;  %v377_v25 = vpack.c.bf16 %v371_v22, %v369_v21  ;;  %v374_v27 = vld [vmem:[%s1459_s28 + $0x30] sm:$0xff]  ;;  %v375_v29 = vld [vmem:[%s1459_s28 + $0x38] sm:$0xff] }
  0x3e   : > { %514 = vmatpush.bf16.msra.mxu0 %v1002_v4  ;;  %625 = vmatpush.bf16.msra.mxu2 %v1019_v13  ;;  %v372_v26 = vld [vmem:[%s1459_s28 + $0x20] sm:$0xff]  ;;  %v373_v28 = vld [vmem:[%s1459_s28 + $0x28] sm:$0xff]  ;;  %v1015_v33 = vld [vmem:[#allocation7 + $0x10] sm:$0xff] }
  0x3f   : > { %533 = vmatpush.bf16.msra.mxu1 %v1010_v5  ;;  %v378_v30 = vpack.c.bf16 %v374_v27, %v372_v26  ;;  %v379_v31 = vpack.c.bf16 %v375_v29, %v373_v28  ;;  %v1016_v32 = vld [vmem:[#allocation7 + $0x18] sm:$0xff]  ;;  %v1014_v34 = vld [vmem:[#allocation7 + $0x8] sm:$0xff]  ;;  %v1013_v35 = vld [vmem:[#allocation7] sm:$0xff] }
  0x40   : > { %v1113_v38 = vld [vmem:[#allocation6] ss:$0 sm:$0xff]  ;;  %v1027_v40 = vld [vmem:[#allocation9 + $0x30] sm:$0xff]  ;;  %v1026_v42 = vld [vmem:[#allocation9 + $0x28] sm:$0xff] }
  0x41   : > { %v1028_v39 = vld [vmem:[#allocation9 + $0x38] sm:$0xff]  ;;  %v1025_v48 = vld [vmem:[#allocation9 + $0x20] sm:$0xff]  ;;  %v1023_v0 = vld [vmem:[#allocation9 + $0x10] sm:$0xff] }
  0x42   : > { %515 = vmatpush.bf16.msra.mxu0 %v1001_v6  ;;  %626 = vmatpush.bf16.msra.mxu2 %v1018_v16  ;;  %v1024_v63 = vld [vmem:[#allocation9 + $0x18] sm:$0xff]  ;;  %v1022_v1 = vld [vmem:[#allocation9 + $0x8] sm:$0xff]  ;;  %v1021_v2 = vld [vmem:[#allocation9] sm:$0xff] }
  0x43   : > { %534 = vmatpush.bf16.msra.mxu1 %v1009_v7  ;;  %717 = vmatpush.bf16.msra.mxu3 %v1028_v39  ;;  %v1114_v4 = vld [vmem:[%s1509_s4] ss:$0 sm:$0xff] }
  0x46   : > { %516 = vmatpush.bf16.msra.mxu0 %v1000_v8  ;;  %627 = vmatpush.bf16.msra.mxu2 %v1017_v23 }
  0x47   : > { %535 = vmatpush.bf16.msra.mxu1 %v1008_v9  ;;  %718 = vmatpush.bf16.msra.mxu3 %v1027_v40 }
  0x4a   : > { %517 = vmatpush.bf16.msra.mxu0 %v999_v11  ;;  %628 = vmatpush.bf16.msra.mxu2 %v1016_v32 }
  0x4b   : > { %536 = vmatpush.bf16.msra.mxu1 %v1007_v12  ;;  %719 = vmatpush.bf16.msra.mxu3 %v1026_v42 }
  0x4e   : > { %518 = vmatpush.bf16.msra.mxu0 %v998_v14  ;;  %629 = vmatpush.bf16.msra.mxu2 %v1015_v33 }
  0x4f   : > { %537 = vmatpush.bf16.msra.mxu1 %v1006_v15  ;;  %720 = vmatpush.bf16.msra.mxu3 %v1025_v48 }
  0x52   : > { %519 = vmatpush.bf16.msra.mxu0 %v997_v17  ;;  %630 = vmatpush.bf16.msra.mxu2 %v1014_v34 }
  0x53   : > { %538 = vmatpush.bf16.msra.mxu1 %v1005_v18  ;;  %721 = vmatpush.bf16.msra.mxu3 %v1024_v63  ;;  %v1115_v18 = vld [vmem:[%s1511_s6] ss:$0 sm:$0xff] }
  0x55   : > { %520 = vmatmul.bf16.vlgmr.msra.gmra.mxu0 %v376_v24 }
  0x56   : > { %539 = vmatmul.bf16.vlgmr.msra.gmra.mxu1 %v377_v25  ;;  %631 = vmatpush.bf16.msra.mxu2 %v1013_v35 }
  0x57   : > { %722 = vmatpush.bf16.msra.mxu3 %v1023_v0 }
  0x5b   : > { %723 = vmatpush.bf16.msra.mxu3 %v1022_v1 }
  0x5f   : > { %724 = vmatpush.bf16.msra.mxu3 %v1021_v2 }
  0x65   : > { %525 = vmatmul.bf16.gmra.mxu0 %v378_v30 }
  0x66   : > { %544 = vmatmul.bf16.gmra.mxu1 %v379_v31 }
  0xd2   : > { %v521_v36 = vpop.f32.mrf.mxu0 }
  0xd3   : > { %v540_v37 = vpop.f32.mrf.mxu1  ;;  %v522_v41 = vadd.f32 %v1113_v38, %v521_v36 }
  0xd5   : > { %v541_v45 = vadd.f32 %v540_v37, %v522_v41 }
  0xd7   : > { %v550_v49 = vmax.f32 %v541_v45, 0.0 }
  0xda   : > { %v523_v43 = vpop.f32.mrf.mxu0 }
  0xdb   : > { %v542_v44 = vpop.f32.mrf.mxu1  ;;  %v524_v46 = vadd.f32 %v1113_v38, %v523_v43 }
  0xdd   : > { %v543_v47 = vadd.f32 %v542_v44, %v524_v46 }
  0xdf   : > { %v551_v50 = vmax.f32 %v543_v47, 0.0 }
  0xe1   : > { %v554_v51 = vpack.c.bf16 %v551_v50, %v550_v49 }
  0xe2   : > { %v526_v52 = vpop.f32.mrf.mxu0 }
  0xe3   : > { %v545_v53 = vpop.f32.mrf.mxu1  ;;  %632 = vmatmul.bf16.vlgmr.msra.gmra.mxu2 %v554_v51  ;;  %v527_v54 = vadd.f32 %v1113_v38, %v526_v52 }
  0xe5   : > { %v546_v56 = vadd.f32 %v545_v53, %v527_v54 }
  0xe7   : > { %v552_v60 = vmax.f32 %v546_v56, 0.0 }
  0xea   : > { %v528_v55 = vpop.f32.mrf.mxu0 }
  0xeb   : > { %v529_v57 = vadd.f32 %v1113_v38, %v528_v55  ;;  %v547_v58 = vpop.f32.mrf.mxu1 }
  0xed   : > { %v548_v59 = vadd.f32 %v547_v58, %v529_v57 }
  0xef   : > { %v553_v61 = vmax.f32 %v548_v59, 0.0 }
  0xf1   : > { %v555_v62 = vpack.c.bf16 %v553_v61, %v552_v60 }
  0xf3   : > { %637 = vmatmul.bf16.gmra.mxu2 %v555_v62 }
 0x166   : > { %v633_v3 = vpop.f32.mrf.mxu2 }
 0x167   : > { %v634_v5 = vadd.f32 %v1114_v4, %v633_v3 }
 0x169   : > { %v643_v8 = vmax.f32 %v634_v5, 0.0 }
 0x16e   : > { %v635_v6 = vpop.f32.mrf.mxu2 }
 0x16f   : > { %v636_v7 = vadd.f32 %v1114_v4, %v635_v6 }
 0x171   : > { %v644_v9 = vmax.f32 %v636_v7, 0.0 }
 0x173   : > { %v647_v10 = vpack.c.bf16 %v644_v9, %v643_v8 }
 0x175   : > { %725 = vmatmul.bf16.vlgmr.msra.gmra.mxu3 %v647_v10 }
 0x176   : > { %v638_v11 = vpop.f32.mrf.mxu2 }
 0x177   : > { %v639_v12 = vadd.f32 %v1114_v4, %v638_v11 }
 0x179   : > { %v645_v15 = vmax.f32 %v639_v12, 0.0 }
 0x17e   : > { %v640_v13 = vpop.f32.mrf.mxu2 }
 0x17f   : > { %v641_v14 = vadd.f32 %v1114_v4, %v640_v13 }
 0x181   : > { %v646_v16 = vmax.f32 %v641_v14, 0.0 }
 0x183   : > { %v648_v17 = vpack.c.bf16 %v646_v16, %v645_v15 }
 0x185   : > { %730 = vmatmul.bf16.gmra.mxu3 %v648_v17 }
 0x1f8   : > { %v726_v19 = vpop.f32.mrf.mxu3 }
 0x1f9   : > { %v727_v20 = vadd.f32 %v1115_v18, %v726_v19 }
 0x1fb   : > { %736 = vst [vmem:[%s366_s20] sm:$0xff] %v727_v20 }
 0x200   : > { %v728_v21 = vpop.f32.mrf.mxu3 }
 0x201   : > { %v729_v22 = vadd.f32 %v1115_v18, %v728_v21 }
 0x203   : > { %737 = vst [vmem:[%s366_s20 + $0x8] sm:$0xff] %v729_v22 }
 0x208   : > { %v731_v23 = vpop.f32.mrf.mxu3 }
 0x209   : > { %v732_v24 = vadd.f32 %v1115_v18, %v731_v23 }
 0x20b   : > { %738 = vst [vmem:[%s366_s20 + $0x10] sm:$0xff] %v732_v24 }
 0x210   : > { %v733_v25 = vpop.f32.mrf.mxu3 }
 0x211   : > { %v734_v26 = vadd.f32 %v1115_v18, %v733_v25 }
 0x213   : > { %739 = vst [vmem:[%s366_s20 + $0x18] sm:$0xff] %v734_v26 }
 0x214 PF: > { %p19_p4 = scmp.ge.s32.totalorder %s1425_s17, 10   ;;  %s1520_s24 = smov %s1300_s25 }
 0x215   : > { %s1521_s25 = smov %s1304_s26  ;;  %s1522_s26 = smov %s1436_s23 }
 0x216   : > { %s1523_s27 = smov %s1425_s17  ;;  %21 = sbr.rel (!%p19_p4) target bundleno = 5 (0x5), region = 104 }
 0x21b   :  { %762 = vsyncpa [#allocation3], 1 }
 0x21c   :  { %764 = vsyncpa [#allocation3 + $0x1], 1 }
 0x21d   :  { %765 = vsyncpa [#allocation5], 1 }
 0x21e   :  { %766 = vsyncpa [#allocation8], 1 }

</bundles_post_ra>
